<compile_context>
chip_gen: v7x
topology: tpu7x:2x2x1
jax: 0.10.0
libtpu: 0.0.40
codegen_flags: <defaults>
</compile_context>

<pallas_src>
import functools
import numpy as np
import jax
import jax.numpy as jnp
from jax.experimental import pallas as pl
from jax.experimental.pallas import tpu as pltpu

LANE = 128      # pad every feature / class dimension to the vreg lane width
SUBLANE = 8     # pad the node dimension to a sublane multiple


# ----------------------------- fused Pallas kernel -------------------------

def _fused_kernel(adj_ref, adj_t_ref, x_ref, w_ref, b_ref, m_ref, o_ref,
                  *, n_dg, n_rd, n_fc):
    """Whole BiGCNFC forward on VMEM-resident, lane-padded tensors.

    adj_ref, adj_t_ref : (N, N)          normalized adjacency / its transpose
    x_ref              : (N, LANE)       zero-padded node features
    w_ref              : (NW, LANE, LANE) stacked zero-padded weights
                         [dgcn..., rdgcn..., fc1_wA, fc1_wB, fc1_rest..., fc2...]
    b_ref              : (NB, LANE)      stacked zero-padded biases
                         [dgcn..., rdgcn..., fc1..., fc2...]
    m_ref              : (3, N, LANE)    combine masks (mask_1/2/3 broadcast)
    o_ref              : (N, LANE)       combined output (all nodes)
    """
    f32 = jnp.float32
    adj = adj_ref[...]
    adj_t = adj_t_ref[...]
    x = x_ref[...]

    wi = iter(range(w_ref.shape[0]))
    bi = iter(range(b_ref.shape[0]))

    def gcn(a, h):
        # GCNBlock: relu(A @ (X @ W) + b); dropout = identity, no BN.
        w = w_ref[next(wi)]
        b = b_ref[next(bi)]
        xw = jnp.dot(h, w, preferred_element_type=f32)
        return jnp.maximum(jnp.dot(a, xw, preferred_element_type=f32) + b, 0.0)

    # Forward-graph GCN stack (DGcn) and reverse-graph GCN stack (RDGcn).
    dg = x
    for _ in range(n_dg):
        dg = gcn(adj, dg)
    rd = x
    for _ in range(n_rd):
        rd = gcn(adj_t, rd)

    # fc_path1 on concat(dg, rd): concat replaced by split-weight sum.
    wa = w_ref[next(wi)]
    wb = w_ref[next(wi)]
    b0 = b_ref[next(bi)]
    h1 = (jnp.dot(dg, wa, preferred_element_type=f32)
          + jnp.dot(rd, wb, preferred_element_type=f32) + b0)
    if n_fc > 1:
        h1 = jnp.maximum(h1, 0.0)
    for i in range(n_fc - 1):
        w = w_ref[next(wi)]
        b = b_ref[next(bi)]
        h1 = jnp.dot(h1, w, preferred_element_type=f32) + b
        if i < n_fc - 2:
            h1 = jnp.maximum(h1, 0.0)

    # fc_path2 applied once to the row-stacked [dg; rd] (halves matmul count).
    h2 = jnp.concatenate([dg, rd], axis=0)
    for i in range(n_fc):
        w = w_ref[next(wi)]
        b = b_ref[next(bi)]
        h2 = jnp.dot(h2, w, preferred_element_type=f32) + b
        if i < n_fc - 1:
            h2 = jnp.maximum(h2, 0.0)
    n = dg.shape[0]
    h21 = h2[:n]
    h22 = h2[n:]

    m1 = m_ref[0]
    m2 = m_ref[1]
    m3 = m_ref[2]
    o_ref[...] = (m1 * h1 + m2 * h21 + m3 * h22).astype(o_ref.dtype)


def fused_forward(adj, adj_t, x_pad, w_stack, b_stack, masks, n_dg, n_rd, n_fc):
    n = x_pad.shape[0]
    kernel = functools.partial(_fused_kernel, n_dg=n_dg, n_rd=n_rd, n_fc=n_fc)
    vmem = pl.BlockSpec(memory_space=pltpu.MemorySpace.VMEM)
    return pl.pallas_call(
        kernel,
        out_shape=jax.ShapeDtypeStruct((n, LANE), jnp.float32),
        in_specs=[vmem] * 6,
        out_specs=vmem,
    )(adj, adj_t, x_pad, w_stack, b_stack, masks)


# ------------------------------ graph glue ---------------------------------

def edge_index_to_adj(n, edge_index):
    a = np.zeros((n, n), dtype=np.float32)
    a[edge_index[0], edge_index[1]] = 1.0
    return a


def norm_adj(a):
    # D^-1/2 (A + I) D^-1/2
    a = a + np.eye(a.shape[0], dtype=np.float32)
    d = a.sum(axis=1)
    d_inv_sqrt = 1.0 / np.sqrt(np.maximum(d, 1e-12))
    return (a * d_inv_sqrt[:, None]) * d_inv_sqrt[None, :]


def mask_h_vector(raw_adj):
    # TODO(synk): approximation of the unavailable reference mask_h_vector().
    out_deg = raw_adj.sum(axis=1) > 0
    in_deg = raw_adj.sum(axis=0) > 0
    m1 = np.logical_or(np.logical_and(out_deg, in_deg),
                       np.logical_and(~out_deg, ~in_deg))  # both (or isolated)
    m2 = np.logical_and(out_deg, ~in_deg)                  # source-only nodes
    m3 = np.logical_and(in_deg, ~out_deg)                  # sink-only nodes
    to_col = lambda v: v.astype(np.float32)[:, None]
    return to_col(m1), to_col(m2), to_col(m3)


# ----------------------------- parameter setup -----------------------------

def init_linear(key, f_in, f_out):
    # matches torch.nn.Linear default: U(-1/sqrt(fan_in), 1/sqrt(fan_in))
    kw, kb = jax.random.split(key)
    bound = 1.0 / np.sqrt(f_in)
    w = jax.random.uniform(kw, (f_in, f_out), jnp.float32, -bound, bound)
    b = jax.random.uniform(kb, (f_out,), jnp.float32, -bound, bound)
    return w, b


def init_params(key, n_features, fwd_hidden, rev_hidden, lin_hidden, n_classes):
    keys = jax.random.split(key, 16)
    k = iter(keys)
    dgcn, rdgcn = [], []
    dims = [n_features] + list(fwd_hidden)
    for i in range(len(fwd_hidden)):
        dgcn.append(init_linear(next(k), dims[i], dims[i + 1]))
    dims = [n_features] + list(rev_hidden)
    for i in range(len(rev_hidden)):
        rdgcn.append(init_linear(next(k), dims[i], dims[i + 1]))

    def init_fc(in_dim):
        layers = []
        d = in_dim
        for h in lin_hidden:
            layers.append(init_linear(next(k), d, h))
            d = h
        layers.append(init_linear(next(k), d, n_classes))  # output layer
        return layers

    fc1 = init_fc(fwd_hidden[-1] + rev_hidden[-1])  # fc_path1
    fc2 = init_fc(fwd_hidden[-1])                   # fc_path2
    return {"dgcn": dgcn, "rdgcn": rdgcn, "fc1": fc1, "fc2": fc2}


def pad_to(a, shape):
    a = jnp.asarray(a)
    pads = [(0, t - s) for s, t in zip(a.shape, shape)]
    return jnp.pad(a, pads)


def build_stacked_params(params, fwd_hidden):
    """Zero-pad every weight to (128,128) / bias to (128,) and stack them."""
    pad_w = lambda w: pad_to(w, (LANE, LANE))
    pad_b = lambda b: pad_to(b, (LANE,))

    ws, bs = [], []
    for w, b in params["dgcn"]:
        ws.append(pad_w(w)); bs.append(pad_b(b))
    for w, b in params["rdgcn"]:
        ws.append(pad_w(w)); bs.append(pad_b(b))
    # fc_path1 first layer: split its weight along the concat (input) dim.
    (w0, b0), rest = params["fc1"][0], params["fc1"][1:]
    split = fwd_hidden[-1]
    ws += [pad_w(w0[:split, :]), pad_w(w0[split:, :])]
    bs.append(pad_b(b0))
    for w, b in rest:
        ws.append(pad_w(w)); bs.append(pad_b(b))
    for w, b in params["fc2"]:
        ws.append(pad_w(w)); bs.append(pad_b(b))
    return jnp.stack(ws), jnp.stack(bs)


# ---------------------------------- main -----------------------------------

if __name__ == "__main__":
    key = jax.random.PRNGKey(0)
    k_x, k_p = jax.random.split(key)

    # small synthetic graph
    N_NODES = 8
    N_FEATURES = 32
    FWD_HIDDEN = [32, 16]
    REV_HIDDEN = [32, 16]
    LIN_HIDDEN = [16]
    N_CLASSES = 4
    assert max([N_FEATURES, N_CLASSES] + FWD_HIDDEN + REV_HIDDEN + LIN_HIDDEN
               + [FWD_HIDDEN[-1] + REV_HIDDEN[-1]]) <= LANE

    x = jax.random.normal(k_x, (N_NODES, N_FEATURES), jnp.float32)

    # directed edges (src, dst)
    edge_index = np.array(
        [[0, 0, 1, 2, 3, 4, 5, 6],
         [1, 2, 3, 3, 4, 5, 6, 7]], dtype=np.int32)

    raw_adj = edge_index_to_adj(N_NODES, edge_index)
    adj_np = norm_adj(raw_adj)            # coo_adj (dense, normalized)
    adj_t_np = adj_np.T.copy()            # coo_adj_T

    mask_np = np.array([True, False, True, True, False, True, True, False])
    mask_idx = jnp.asarray(np.nonzero(mask_np)[0])

    m1_np, m2_np, m3_np = mask_h_vector(raw_adj)   # full-node [N, 1] masks

    params = init_params(k_p, N_FEATURES, FWD_HIDDEN, REV_HIDDEN,
                         LIN_HIDDEN, N_CLASSES)
    w_stack, b_stack = build_stacked_params(params, FWD_HIDDEN)

    # pad node dimension to a sublane multiple (already 8 here)
    n_pad = ((N_NODES + SUBLANE - 1) // SUBLANE) * SUBLANE
    adj = pad_to(adj_np, (n_pad, n_pad))
    adj_t = pad_to(adj_t_np, (n_pad, n_pad))
    x_pad = pad_to(x, (n_pad, LANE))
    masks = jnp.stack([
        pad_to(jnp.broadcast_to(jnp.asarray(m1_np), (N_NODES, LANE)), (n_pad, LANE)),
        pad_to(jnp.broadcast_to(jnp.asarray(m2_np), (N_NODES, LANE)), (n_pad, LANE)),
        pad_to(jnp.broadcast_to(jnp.asarray(m3_np), (N_NODES, LANE)), (n_pad, LANE)),
    ])

    n_dg = len(FWD_HIDDEN)
    n_rd = len(REV_HIDDEN)
    n_fc = len(LIN_HIDDEN) + 1

    out_full = fused_forward(adj, adj_t, x_pad, w_stack, b_stack, masks,
                             n_dg, n_rd, n_fc)
    # masked-row / class-column selection on the tiny (N, 128) kernel output
    out = out_full[mask_idx][:, :N_CLASSES]
    out = jax.block_until_ready(out)

    # -------- pure-JAX reference (unpadded, per-layer) for validation --------
    def ref_forward():
        adj_r = jnp.asarray(adj_np)
        adj_t_r = jnp.asarray(adj_t_np)

        def gcn_ref(a, h, w, b):
            return jnp.maximum(a @ (h @ w) + b, 0.0)

        h = x
        for w, b in params["dgcn"]:
            h = gcn_ref(adj_r, h, w, b)
        dg = h[mask_idx]
        h = x
        for w, b in params["rdgcn"]:
            h = gcn_ref(adj_t_r, h, w, b)
        rd = h[mask_idx]

        def fc_ref(layers, h):
            for i, (w, b) in enumerate(layers):
                h = h @ w + b
                if i < len(layers) - 1:
                    h = jnp.maximum(h, 0.0)
            return h

        h1 = fc_ref(params["fc1"], jnp.concatenate([dg, rd], axis=1))
        h21 = fc_ref(params["fc2"], dg)
        h22 = fc_ref(params["fc2"], rd)
        mm1 = jnp.asarray(m1_np)[mask_idx]
        mm2 = jnp.asarray(m2_np)[mask_idx]
        mm3 = jnp.asarray(m3_np)[mask_idx]
        return mm1 * h1 + mm2 * h21 + mm3 * h22

    with jax.default_matmul_precision("float32"):
        ref = jax.block_until_ready(ref_forward())

    assert out.shape == (int(mask_np.sum()), N_CLASSES)
    assert bool(jnp.all(jnp.isfinite(out)))
    assert bool(jnp.allclose(out, ref, rtol=5e-2, atol=5e-2))
    print("KERNEL_OK")
</pallas_src>

<mosaic_0001>
module attributes {stable_mosaic.version = 11 : i64} {
  func.func @_fused_kernel(%arg0: memref<8x8xf32, #tpu.memory_space<vmem>>, %arg1: memref<8x8xf32, #tpu.memory_space<vmem>>, %arg2: memref<8x128xf32, #tpu.memory_space<vmem>>, %arg3: memref<9x128x128xf32, #tpu.memory_space<vmem>>, %arg4: memref<8x128xf32, #tpu.memory_space<vmem>>, %arg5: memref<3x8x128xf32, #tpu.memory_space<vmem>>, %arg6: memref<8x128xf32, #tpu.memory_space<vmem>>) attributes {dimension_semantics = [], scalar_prefetch = 0 : i64, scratch_operands = 0 : i64, tpu.core_type = #tpu.core_type<tc>} {
    %c0 = arith.constant 0 : index
    %c0_0 = arith.constant 0 : index
    %0 = vector.load %arg0[%c0, %c0_0] : memref<8x8xf32, #tpu.memory_space<vmem>>, vector<8x8xf32>
    %c0_1 = arith.constant 0 : index
    %c0_2 = arith.constant 0 : index
    %1 = vector.load %arg1[%c0_1, %c0_2] : memref<8x8xf32, #tpu.memory_space<vmem>>, vector<8x8xf32>
    %c0_3 = arith.constant 0 : index
    %c0_4 = arith.constant 0 : index
    %2 = vector.load %arg2[%c0_3, %c0_4] : memref<8x128xf32, #tpu.memory_space<vmem>>, vector<8x128xf32>
    %c0_5 = arith.constant 0 : index
    %c0_6 = arith.constant 0 : index
    %c0_7 = arith.constant 0 : index
    %3 = vector.load %arg3[%c0_5, %c0_6, %c0_7] : memref<9x128x128xf32, #tpu.memory_space<vmem>>, vector<1x128x128xf32>
    %4 = vector.shape_cast %3 : vector<1x128x128xf32> to vector<128x128xf32>
    %c0_8 = arith.constant 0 : index
    %c0_9 = arith.constant 0 : index
    %5 = vector.load %arg4[%c0_8, %c0_9] : memref<8x128xf32, #tpu.memory_space<vmem>>, vector<1x128xf32>
    %6 = vector.shape_cast %5 : vector<1x128xf32> to vector<128xf32>
    %cst = arith.constant dense<0.000000e+00> : vector<8x128xf32>
    %7 = tpu.matmul %2, %4, %cst {dimension_numbers = #tpu.dot_dimension_numbers<[1], [0], [0], [1], [0, 0, 1, 1], [], []>} : vector<8x128xf32>, vector<128x128xf32>, vector<8x128xf32> -> vector<8x128xf32>
    %cst_10 = arith.constant dense<0.000000e+00> : vector<8x128xf32>
    %8 = tpu.matmul %0, %7, %cst_10 {dimension_numbers = #tpu.dot_dimension_numbers<[1], [0], [0], [1], [0, 0, 1, 1], [], []>} : vector<8x8xf32>, vector<8x128xf32>, vector<8x128xf32> -> vector<8x128xf32>
    %9 = vector.shape_cast %6 : vector<128xf32> to vector<1x128xf32>
    %10 = vector.broadcast %9 : vector<1x128xf32> to vector<8x128xf32>
    %11 = arith.addf %8, %10 : vector<8x128xf32>
    %cst_11 = arith.constant 0.000000e+00 : f32
    %12 = vector.broadcast %cst_11 : f32 to vector<8x128xf32>
    %13 = arith.maximumf %11, %12 : vector<8x128xf32>
    %c1 = arith.constant 1 : index
    %c0_12 = arith.constant 0 : index
    %c0_13 = arith.constant 0 : index
    %14 = vector.load %arg3[%c1, %c0_12, %c0_13] : memref<9x128x128xf32, #tpu.memory_space<vmem>>, vector<1x128x128xf32>
    %15 = vector.shape_cast %14 : vector<1x128x128xf32> to vector<128x128xf32>
    %c1_14 = arith.constant 1 : index
    %c0_15 = arith.constant 0 : index
    %16 = vector.load %arg4[%c1_14, %c0_15] : memref<8x128xf32, #tpu.memory_space<vmem>>, vector<1x128xf32>
    %17 = vector.shape_cast %16 : vector<1x128xf32> to vector<128xf32>
    %cst_16 = arith.constant dense<0.000000e+00> : vector<8x128xf32>
    %18 = tpu.matmul %13, %15, %cst_16 {dimension_numbers = #tpu.dot_dimension_numbers<[1], [0], [0], [1], [0, 0, 1, 1], [], []>} : vector<8x128xf32>, vector<128x128xf32>, vector<8x128xf32> -> vector<8x128xf32>
    %cst_17 = arith.constant dense<0.000000e+00> : vector<8x128xf32>
    %19 = tpu.matmul %0, %18, %cst_17 {dimension_numbers = #tpu.dot_dimension_numbers<[1], [0], [0], [1], [0, 0, 1, 1], [], []>} : vector<8x8xf32>, vector<8x128xf32>, vector<8x128xf32> -> vector<8x128xf32>
    %20 = vector.shape_cast %17 : vector<128xf32> to vector<1x128xf32>
    %21 = vector.broadcast %20 : vector<1x128xf32> to vector<8x128xf32>
    %22 = arith.addf %19, %21 : vector<8x128xf32>
    %cst_18 = arith.constant 0.000000e+00 : f32
    %23 = vector.broadcast %cst_18 : f32 to vector<8x128xf32>
    %24 = arith.maximumf %22, %23 : vector<8x128xf32>
    %c2 = arith.constant 2 : index
    %c0_19 = arith.constant 0 : index
    %c0_20 = arith.constant 0 : index
    %25 = vector.load %arg3[%c2, %c0_19, %c0_20] : memref<9x128x128xf32, #tpu.memory_space<vmem>>, vector<1x128x128xf32>
    %26 = vector.shape_cast %25 : vector<1x128x128xf32> to vector<128x128xf32>
    %c2_21 = arith.constant 2 : index
    %c0_22 = arith.constant 0 : index
    %27 = vector.load %arg4[%c2_21, %c0_22] : memref<8x128xf32, #tpu.memory_space<vmem>>, vector<1x128xf32>
    %28 = vector.shape_cast %27 : vector<1x128xf32> to vector<128xf32>
    %cst_23 = arith.constant dense<0.000000e+00> : vector<8x128xf32>
    %29 = tpu.matmul %2, %26, %cst_23 {dimension_numbers = #tpu.dot_dimension_numbers<[1], [0], [0], [1], [0, 0, 1, 1], [], []>} : vector<8x128xf32>, vector<128x128xf32>, vector<8x128xf32> -> vector<8x128xf32>
    %cst_24 = arith.constant dense<0.000000e+00> : vector<8x128xf32>
    %30 = tpu.matmul %1, %29, %cst_24 {dimension_numbers = #tpu.dot_dimension_numbers<[1], [0], [0], [1], [0, 0, 1, 1], [], []>} : vector<8x8xf32>, vector<8x128xf32>, vector<8x128xf32> -> vector<8x128xf32>
    %31 = vector.shape_cast %28 : vector<128xf32> to vector<1x128xf32>
    %32 = vector.broadcast %31 : vector<1x128xf32> to vector<8x128xf32>
    %33 = arith.addf %30, %32 : vector<8x128xf32>
    %cst_25 = arith.constant 0.000000e+00 : f32
    %34 = vector.broadcast %cst_25 : f32 to vector<8x128xf32>
    %35 = arith.maximumf %33, %34 : vector<8x128xf32>
    %c3 = arith.constant 3 : index
    %c0_26 = arith.constant 0 : index
    %c0_27 = arith.constant 0 : index
    %36 = vector.load %arg3[%c3, %c0_26, %c0_27] : memref<9x128x128xf32, #tpu.memory_space<vmem>>, vector<1x128x128xf32>
    %37 = vector.shape_cast %36 : vector<1x128x128xf32> to vector<128x128xf32>
    %c3_28 = arith.constant 3 : index
    %c0_29 = arith.constant 0 : index
    %38 = vector.load %arg4[%c3_28, %c0_29] : memref<8x128xf32, #tpu.memory_space<vmem>>, vector<1x128xf32>
    %39 = vector.shape_cast %38 : vector<1x128xf32> to vector<128xf32>
    %cst_30 = arith.constant dense<0.000000e+00> : vector<8x128xf32>
    %40 = tpu.matmul %35, %37, %cst_30 {dimension_numbers = #tpu.dot_dimension_numbers<[1], [0], [0], [1], [0, 0, 1, 1], [], []>} : vector<8x128xf32>, vector<128x128xf32>, vector<8x128xf32> -> vector<8x128xf32>
    %cst_31 = arith.constant dense<0.000000e+00> : vector<8x128xf32>
    %41 = tpu.matmul %1, %40, %cst_31 {dimension_numbers = #tpu.dot_dimension_numbers<[1], [0], [0], [1], [0, 0, 1, 1], [], []>} : vector<8x8xf32>, vector<8x128xf32>, vector<8x128xf32> -> vector<8x128xf32>
    %42 = vector.shape_cast %39 : vector<128xf32> to vector<1x128xf32>
    %43 = vector.broadcast %42 : vector<1x128xf32> to vector<8x128xf32>
    %44 = arith.addf %41, %43 : vector<8x128xf32>
    %cst_32 = arith.constant 0.000000e+00 : f32
    %45 = vector.broadcast %cst_32 : f32 to vector<8x128xf32>
    %46 = arith.maximumf %44, %45 : vector<8x128xf32>
    %c4 = arith.constant 4 : index
    %c0_33 = arith.constant 0 : index
    %c0_34 = arith.constant 0 : index
    %47 = vector.load %arg3[%c4, %c0_33, %c0_34] : memref<9x128x128xf32, #tpu.memory_space<vmem>>, vector<1x128x128xf32>
    %48 = vector.shape_cast %47 : vector<1x128x128xf32> to vector<128x128xf32>
    %c5 = arith.constant 5 : index
    %c0_35 = arith.constant 0 : index
    %c0_36 = arith.constant 0 : index
    %49 = vector.load %arg3[%c5, %c0_35, %c0_36] : memref<9x128x128xf32, #tpu.memory_space<vmem>>, vector<1x128x128xf32>
    %50 = vector.shape_cast %49 : vector<1x128x128xf32> to vector<128x128xf32>
    %c4_37 = arith.constant 4 : index
    %c0_38 = arith.constant 0 : index
    %51 = vector.load %arg4[%c4_37, %c0_38] : memref<8x128xf32, #tpu.memory_space<vmem>>, vector<1x128xf32>
    %52 = vector.shape_cast %51 : vector<1x128xf32> to vector<128xf32>
    %cst_39 = arith.constant dense<0.000000e+00> : vector<8x128xf32>
    %53 = tpu.matmul %24, %48, %cst_39 {dimension_numbers = #tpu.dot_dimension_numbers<[1], [0], [0], [1], [0, 0, 1, 1], [], []>} : vector<8x128xf32>, vector<128x128xf32>, vector<8x128xf32> -> vector<8x128xf32>
    %cst_40 = arith.constant dense<0.000000e+00> : vector<8x128xf32>
    %54 = tpu.matmul %46, %50, %cst_40 {dimension_numbers = #tpu.dot_dimension_numbers<[1], [0], [0], [1], [0, 0, 1, 1], [], []>} : vector<8x128xf32>, vector<128x128xf32>, vector<8x128xf32> -> vector<8x128xf32>
    %55 = arith.addf %53, %54 : vector<8x128xf32>
    %56 = vector.shape_cast %52 : vector<128xf32> to vector<1x128xf32>
    %57 = vector.broadcast %56 : vector<1x128xf32> to vector<8x128xf32>
    %58 = arith.addf %55, %57 : vector<8x128xf32>
    %cst_41 = arith.constant 0.000000e+00 : f32
    %59 = vector.broadcast %cst_41 : f32 to vector<8x128xf32>
    %60 = arith.maximumf %58, %59 : vector<8x128xf32>
    %c6 = arith.constant 6 : index
    %c0_42 = arith.constant 0 : index
    %c0_43 = arith.constant 0 : index
    %61 = vector.load %arg3[%c6, %c0_42, %c0_43] : memref<9x128x128xf32, #tpu.memory_space<vmem>>, vector<1x128x128xf32>
    %62 = vector.shape_cast %61 : vector<1x128x128xf32> to vector<128x128xf32>
    %c5_44 = arith.constant 5 : index
    %c0_45 = arith.constant 0 : index
    %63 = vector.load %arg4[%c5_44, %c0_45] : memref<8x128xf32, #tpu.memory_space<vmem>>, vector<1x128xf32>
    %64 = vector.shape_cast %63 : vector<1x128xf32> to vector<128xf32>
    %cst_46 = arith.constant dense<0.000000e+00> : vector<8x128xf32>
    %65 = tpu.matmul %60, %62, %cst_46 {dimension_numbers = #tpu.dot_dimension_numbers<[1], [0], [0], [1], [0, 0, 1, 1], [], []>} : vector<8x128xf32>, vector<128x128xf32>, vector<8x128xf32> -> vector<8x128xf32>
    %66 = vector.shape_cast %64 : vector<128xf32> to vector<1x128xf32>
    %67 = vector.broadcast %66 : vector<1x128xf32> to vector<8x128xf32>
    %68 = arith.addf %65, %67 : vector<8x128xf32>
    %69 = tpu.concatenate %24, %46 in 0 : vector<8x128xf32>, vector<8x128xf32> -> vector<16x128xf32>
    %c7 = arith.constant 7 : index
    %c0_47 = arith.constant 0 : index
    %c0_48 = arith.constant 0 : index
    %70 = vector.load %arg3[%c7, %c0_47, %c0_48] : memref<9x128x128xf32, #tpu.memory_space<vmem>>, vector<1x128x128xf32>
    %71 = vector.shape_cast %70 : vector<1x128x128xf32> to vector<128x128xf32>
    %c6_49 = arith.constant 6 : index
    %c0_50 = arith.constant 0 : index
    %72 = vector.load %arg4[%c6_49, %c0_50] : memref<8x128xf32, #tpu.memory_space<vmem>>, vector<1x128xf32>
    %73 = vector.shape_cast %72 : vector<1x128xf32> to vector<128xf32>
    %cst_51 = arith.constant dense<0.000000e+00> : vector<16x128xf32>
    %74 = tpu.matmul %69, %71, %cst_51 {dimension_numbers = #tpu.dot_dimension_numbers<[1], [0], [0], [1], [0, 0, 1, 1], [], []>} : vector<16x128xf32>, vector<128x128xf32>, vector<16x128xf32> -> vector<16x128xf32>
    %75 = vector.shape_cast %73 : vector<128xf32> to vector<1x128xf32>
    %76 = vector.broadcast %75 : vector<1x128xf32> to vector<16x128xf32>
    %77 = arith.addf %74, %76 : vector<16x128xf32>
    %cst_52 = arith.constant 0.000000e+00 : f32
    %78 = vector.broadcast %cst_52 : f32 to vector<16x128xf32>
    %79 = arith.maximumf %77, %78 : vector<16x128xf32>
    %c8 = arith.constant 8 : index
    %c0_53 = arith.constant 0 : index
    %c0_54 = arith.constant 0 : index
    %80 = vector.load %arg3[%c8, %c0_53, %c0_54] : memref<9x128x128xf32, #tpu.memory_space<vmem>>, vector<1x128x128xf32>
    %81 = vector.shape_cast %80 : vector<1x128x128xf32> to vector<128x128xf32>
    %c7_55 = arith.constant 7 : index
    %c0_56 = arith.constant 0 : index
    %82 = vector.load %arg4[%c7_55, %c0_56] : memref<8x128xf32, #tpu.memory_space<vmem>>, vector<1x128xf32>
    %83 = vector.shape_cast %82 : vector<1x128xf32> to vector<128xf32>
    %cst_57 = arith.constant dense<0.000000e+00> : vector<16x128xf32>
    %84 = tpu.matmul %79, %81, %cst_57 {dimension_numbers = #tpu.dot_dimension_numbers<[1], [0], [0], [1], [0, 0, 1, 1], [], []>} : vector<16x128xf32>, vector<128x128xf32>, vector<16x128xf32> -> vector<16x128xf32>
    %85 = vector.shape_cast %83 : vector<128xf32> to vector<1x128xf32>
    %86 = vector.broadcast %85 : vector<1x128xf32> to vector<16x128xf32>
    %87 = arith.addf %84, %86 : vector<16x128xf32>
    %88 = vector.extract_strided_slice %87 {offsets = [0, 0], sizes = [8, 128], strides = [1, 1]} : vector<16x128xf32> to vector<8x128xf32>
    %89 = vector.extract_strided_slice %87 {offsets = [8, 0], sizes = [8, 128], strides = [1, 1]} : vector<16x128xf32> to vector<8x128xf32>
    %c0_58 = arith.constant 0 : index
    %c0_59 = arith.constant 0 : index
    %c0_60 = arith.constant 0 : index
    %90 = vector.load %arg5[%c0_58, %c0_59, %c0_60] : memref<3x8x128xf32, #tpu.memory_space<vmem>>, vector<1x8x128xf32>
    %91 = vector.shape_cast %90 : vector<1x8x128xf32> to vector<8x128xf32>
    %c1_61 = arith.constant 1 : index
    %c0_62 = arith.constant 0 : index
    %c0_63 = arith.constant 0 : index
    %92 = vector.load %arg5[%c1_61, %c0_62, %c0_63] : memref<3x8x128xf32, #tpu.memory_space<vmem>>, vector<1x8x128xf32>
    %93 = vector.shape_cast %92 : vector<1x8x128xf32> to vector<8x128xf32>
    %c2_64 = arith.constant 2 : index
    %c0_65 = arith.constant 0 : index
    %c0_66 = arith.constant 0 : index
    %94 = vector.load %arg5[%c2_64, %c0_65, %c0_66] : memref<3x8x128xf32, #tpu.memory_space<vmem>>, vector<1x8x128xf32>
    %95 = vector.shape_cast %94 : vector<1x8x128xf32> to vector<8x128xf32>
    %96 = arith.mulf %91, %68 : vector<8x128xf32>
    %97 = arith.mulf %93, %88 : vector<8x128xf32>
    %98 = arith.addf %96, %97 : vector<8x128xf32>
    %99 = arith.mulf %95, %89 : vector<8x128xf32>
    %100 = arith.addf %98, %99 : vector<8x128xf32>
    %c0_67 = arith.constant 0 : index
    %c0_68 = arith.constant 0 : index
    %101 = vector.load %arg6[%c0_67, %c0_68] : memref<8x128xf32, #tpu.memory_space<vmem>>, vector<8x128xf32>
    tpu.vector_store %arg6[%c0_67, %c0_68], %100 {strides = array<i32>} : memref<8x128xf32, #tpu.memory_space<vmem>>, vector<8x128xf32>,
    return
  }
}

</mosaic_0001>

<bundles_post_ra>
// kernel: tpu_custom_call.1
= control target key start
LH: loop header
LB: loop body
LE: loop exit
PB: predicated region body
PF: predicated region fallthrough
CT: control target
= control target key end

     0   :  { %11 = vsyncpa [#allocation3], 0  ;;  %s2393_s0 = inlined_call_operand.hbm [shape: f32[8,8], index: 0, kind: input, shape index: {}]   ;;  %s2394_s1 = inlined_call_operand.hbm [shape: f32[8,8], index: 1, kind: input, shape index: {}]   ;;  %s2395_s2 = inlined_call_operand.hbm [shape: f32[8,128], index: 2, kind: input, shape index: {}]   ;;  %s2396_s3 = inlined_call_operand.hbm [shape: f32[9,128,128], index: 3, kind: input, shape index: {}]   ;;  %s2397_s4 = inlined_call_operand.vmem [shape: f32[8,128], index: 4, kind: input, shape index: {}]   ;;  %s2398_s5 = inlined_call_operand.hbm [shape: f32[3,8,128], index: 5, kind: input, shape index: {}]   ;;  %s2399_s6 = inlined_call_operand.hbm [shape: f32[8,128], index: 6, kind: output, shape index: {}]  }
   0x1   :  { %12 = vsyncpa [#allocation6], 0 }
   0x2   :  { %13 = vsyncpa [#allocation9], 0 }
   0x3   :  { %14 = vsyncpa [#allocation4], 0  ;;  %s2137_s21 = smov [#allocation5]   ;;  %s2138_s23 = smov [#allocation8]  }
   0x4   :  { %s31_s22 = sshll.u32 %s2137_s21, 4  ;;  %s50_s24 = sshll.u32 %s2138_s23, 4  ;;  %s32_s22 = int_to_ptr.vmem [resolvable:$true] %s31_s22  ;;  %s2183_s24 = int_to_ptr.vmem [resolvable:$true] %s50_s24 }
   0x5   :  { %s1997_s27 = scalar_lea.hbm %s2394_s1, 128 }
   0x6   :  { %p1998_p0 = scmp.ne.s32.totalorder %s2394_s1, %s1997_s27  ;;  %p2001_p1 = scmp.lt.u32.totalorder %s1997_s27, %s2394_s1 }
   0x8   :  { %p2003_p2 = pnand %p2001_p1, %p1998_p0 }
   0xa   :  { %2006 = shalt.err (!%p2003_p2)
}
   0xb   :  { %s2007_s8 = scalar_lea.vmem %s32_s22, 128  ;;  %p2012_p4 = scmp.lt.s32.totalorder %s32_s22, %s32_s22 }
   0xc   :  { %p2008_p3 = scmp.ne.s32.totalorder %s32_s22, %s2007_s8  ;;  %p2013_p5 = scmp.lt.s32.totalorder %s2007_s8, %s2007_s8 }
   0xe   :  { %p2014_p6 = por %p2013_p5, %p2012_p4 }
  0x10   :  { %p2015_p7 = pnand %p2014_p6, %p2008_p3 }
  0x12   :  { %2018 = shalt.err (!%p2015_p7)
}
  0x13   :  { %34 = dma.hbm_to_vmem [thread:$0]  %s2394_s1, 128, %s32_s22, [#allocation6]  }
  0x14   :  { %s2019_s13 = scalar_lea.hbm %s2396_s3, 18432 }
  0x15   :  { %p2020_p8 = scmp.ne.s32.totalorder %s2396_s3, %s2019_s13  ;;  %p2023_p9 = scmp.lt.u32.totalorder %s2019_s13, %s2396_s3 }
  0x17   :  { %p2025_p10 = pnand %p2023_p9, %p2020_p8 }
  0x19   :  { %2028 = shalt.err (!%p2025_p10)
}
  0x1a   :  { %s2029_s18 = scalar_lea.vmem %s2183_s24, 18432  ;;  %p2034_p12 = scmp.lt.s32.totalorder %s2183_s24, %s2183_s24 }
  0x1b   :  { %p2030_p11 = scmp.ne.s32.totalorder %s2183_s24, %s2029_s18  ;;  %p2035_p13 = scmp.lt.s32.totalorder %s2029_s18, %s2029_s18 }
  0x1d   :  { %p2036_p0 = por %p2035_p13, %p2034_p12 }
  0x1f   :  { %p2037_p1 = pnand %p2036_p0, %p2030_p11 }
  0x21   :  { %2040 = shalt.err (!%p2037_p1)
}
  0x22   :  { %s2139_s1 = smov 128   ;;  %s2140_s19 = smov 8  }
  0x23   :  { %56 = dma.hbm_to_vmem [thread:$0]  %s2396_s3, 18432, %s2183_s24, [#allocation9], %s2139_s1, %s2139_s1, %s2140_s19  }
  0x24   :  { %s2141_s22 = smov [#allocation2]   ;;  %s2142_s25 = smov [#allocation7]  }
  0x25   :  { %s21_s23 = sshll.u32 %s2141_s22, 4  ;;  %s41_s26 = sshll.u32 %s2142_s25, 4  ;;  %s22_s23 = int_to_ptr.vmem [resolvable:$true] %s21_s23  ;;  %s42_s26 = int_to_ptr.vmem [resolvable:$true] %s41_s26 }
  0x26   :  { %s2041_s29 = scalar_lea.hbm %s2393_s0, 128 }
  0x27   :  { %p2042_p2 = scmp.ne.s32.totalorder %s2393_s0, %s2041_s29  ;;  %p2045_p3 = scmp.lt.u32.totalorder %s2041_s29, %s2393_s0 }
  0x29   :  { %p2047_p4 = pnand %p2045_p3, %p2042_p2 }
  0x2b   :  { %2050 = shalt.err (!%p2047_p4)
}
  0x2c   :  { %s2051_s3 = scalar_lea.vmem %s22_s23, 128  ;;  %p2056_p6 = scmp.lt.s32.totalorder %s22_s23, %s22_s23 }
  0x2d   :  { %p2052_p5 = scmp.ne.s32.totalorder %s22_s23, %s2051_s3  ;;  %p2057_p7 = scmp.lt.s32.totalorder %s2051_s3, %s2051_s3 }
  0x2f   :  { %p2058_p8 = por %p2057_p7, %p2056_p6 }
  0x31   :  { %p2059_p9 = pnand %p2058_p8, %p2052_p5 }
  0x33   :  { %2062 = shalt.err (!%p2059_p9)
}
  0x34   :  { %24 = dma.hbm_to_vmem [thread:$0]  %s2393_s0, 128, %s22_s23, [#allocation3]  }
  0x35   :  { %s2063_s13 = scalar_lea.hbm %s2395_s2, 128 }
  0x36   :  { %p2064_p10 = scmp.ne.s32.totalorder %s2395_s2, %s2063_s13  ;;  %p2067_p11 = scmp.lt.u32.totalorder %s2063_s13, %s2395_s2 }
  0x38   :  { %p2069_p12 = pnand %p2067_p11, %p2064_p10 }
  0x3a   :  { %2072 = shalt.err (!%p2069_p12)
}
  0x3b   :  { %s2073_s18 = scalar_lea.vmem %s42_s26, 128  ;;  %p2078_p0 = scmp.lt.s32.totalorder %s42_s26, %s42_s26 }
  0x3c   :  { %p2074_p13 = scmp.ne.s32.totalorder %s42_s26, %s2073_s18  ;;  %p2079_p1 = scmp.lt.s32.totalorder %s2073_s18, %s2073_s18 }
  0x3e   :  { %p2080_p2 = por %p2079_p1, %p2078_p0 }
  0x40   :  { %p2081_p3 = pnand %p2080_p2, %p2074_p13 }
  0x42   :  { %2084 = shalt.err (!%p2081_p3)
}
  0x43   :  { %44 = dma.hbm_to_vmem [thread:$0]  %s2395_s2, 128, %s42_s26, [#allocation6]  }
  0x44   :  { %s2143_s21 = smov [#allocation10]   ;;  %s2085_s27 = scalar_lea.hbm %s2398_s5, 384 }
  0x45   :  { %s64_s22 = sshll.u32 %s2143_s21, 4  ;;  %p2086_p4 = scmp.ne.s32.totalorder %s2398_s5, %s2085_s27  ;;  %s65_s22 = int_to_ptr.vmem [resolvable:$true] %s64_s22 }
  0x46   :  { %p2089_p5 = scmp.lt.u32.totalorder %s2085_s27, %s2398_s5 }
  0x48   :  { %p2091_p6 = pnand %p2089_p5, %p2086_p4 }
  0x4a   :  { %2094 = shalt.err (!%p2091_p6)
}
  0x4b   :  { %s2095_s8 = scalar_lea.vmem %s65_s22, 384  ;;  %p2100_p8 = scmp.lt.s32.totalorder %s65_s22, %s65_s22 }
  0x4c   :  { %p2096_p7 = scmp.ne.s32.totalorder %s65_s22, %s2095_s8  ;;  %p2101_p9 = scmp.lt.s32.totalorder %s2095_s8, %s2095_s8 }
  0x4e   :  { %p2102_p10 = por %p2101_p9, %p2100_p8 }
  0x50   :  { %p2103_p11 = pnand %p2102_p10, %p2096_p7 }
  0x52   :  { %2106 = shalt.err (!%p2103_p11)
}
  0x53   :  { %70 = dma.hbm_to_vmem [thread:$0]  %s2398_s5, 384, %s65_s22, [#allocation9], %s2139_s1, %s2139_s1, %s2140_s19  }
  0x54   :  { %2129 = dma.done.wait [#allocation3], 128  }
  0x55   :  { %2130 = vsyncadd [#allocation3], 4294967168 }
  0x56   :  { %2131 = dma.done.wait [#allocation6], 256  }
  0x57   :  { %2132 = vsyncadd [#allocation6], 4294967040 }
  0x58   :  { %2133 = dma.done.wait [#allocation9], 18816  }
  0x59   :  { %2134 = vsyncadd [#allocation9], 4294948480  ;;  %v2144_v0 = vmov 0.0|0.0   ;;  %vm2145_vm0 = vmmov 0   ;;  %v2146_v1 = vmov 0.0   ;;  %v89_v2 = vld [vmem:[#allocation8] sm:$0xff] }
  0x5a   :  { %1754 = vmatprep.subr.bf16.mxu0 %v2144_v0  ;;  %1451 = vmatprep.mubr.msk.f32.mxu0 %vm2145_vm0, %v2146_v1  ;;  %v90_v3 = vld [vmem:[#allocation8 + $0x8] sm:$0xff]  ;;  %v91_v4 = vld [vmem:[#allocation8 + $0x10] sm:$0xff]  ;;  %v92_v6 = vld [vmem:[#allocation8 + $0x18] sm:$0xff]  ;;  %vm180_vm1 = vcmask 64512   ;;  %s2147_s20 = smov [#allocation11]  }
  0x5b   :  { %1778 = vmatprep.subr.bf16.mxu1 %v2144_v0  ;;  %1491 = vmatprep.mubr.msk.f32.mxu1 %vm2145_vm0, %v2146_v1  ;;  %v1755_v5 = vpack.c.bf16 %v90_v3, %v89_v2  ;;  %v1758_v7 = vpack.c.bf16 %v92_v6, %v91_v4  ;;  %v93_v8 = vld [vmem:[#allocation8 + $0x20] sm:$0xff]  ;;  %v94_v9 = vld [vmem:[#allocation8 + $0x28] sm:$0xff]  ;;  %v95_v11 = vld [vmem:[#allocation8 + $0x30] sm:$0xff]  ;;  %s1233_s21 = sshll.u32 %s2147_s20, 4  ;;  %s1234_s21 = int_to_ptr.vmem [resolvable:$true] %s1233_s21 }
  0x5c   :  { %v1761_v10 = vpack.c.bf16 %v94_v9, %v93_v8  ;;  %v96_v12 = vld [vmem:[#allocation8 + $0x38] sm:$0xff]  ;;  %v97_v14 = vld [vmem:[#allocation8 + $0x40] sm:$0xff]  ;;  %v98_v15 = vld [vmem:[#allocation8 + $0x48] sm:$0xff]  ;;  %s2107_s22 = scalar_lea.vmem %s1234_s21, 128  ;;  %p2112_p13 = scmp.lt.s32.totalorder %s1234_s21, %s1234_s21 }
  0x5d   :  { %1756 = vmatpush3.bf16.msra.mxu0 %v1755_v5  ;;  %v1764_v13 = vpack.c.bf16 %v96_v12, %v95_v11  ;;  %v1767_v16 = vpack.c.bf16 %v98_v15, %v97_v14  ;;  %v99_v17 = vld [vmem:[#allocation8 + $0x50] sm:$0xff]  ;;  %v100_v18 = vld [vmem:[#allocation8 + $0x58] sm:$0xff]  ;;  %v101_v20 = vld [vmem:[#allocation8 + $0x60] sm:$0xff]  ;;  %p2108_p12 = scmp.ne.s32.totalorder %s1234_s21, %s2107_s22  ;;  %p2113_p0 = scmp.lt.s32.totalorder %s2107_s22, %s2107_s22 }
  0x5e   :  { %1757 = vmatprep.subr.bf16.mxu0 %v2144_v0  ;;  %v1770_v19 = vpack.c.bf16 %v100_v18, %v99_v17  ;;  %v102_v21 = vld [vmem:[#allocation8 + $0x68] sm:$0xff]  ;;  %v103_v23 = vld [vmem:[#allocation8 + $0x70] sm:$0xff]  ;;  %v104_v24 = vld [vmem:[#allocation8 + $0x78] sm:$0xff] }
  0x5f   :  { %v1773_v22 = vpack.c.bf16 %v102_v21, %v101_v20  ;;  %v1776_v25 = vpack.c.bf16 %v104_v24, %v103_v23  ;;  %v2269_v26 = vld [vmem:[#allocation7] sm:$0xff]  ;;  %v256_v27 = vld [vmem:[#allocation8 + $0x80] sm:$0xff]  ;;  %v257_v28 = vld [vmem:[#allocation8 + $0x88] sm:$0xff]  ;;  %p2114_p1 = por %p2113_p0, %p2112_p13 }
  0x60   :  { %v258_v29 = vld [vmem:[#allocation8 + $0x90] sm:$0xff]  ;;  %v1779_v30 = vpack.c.bf16 %v257_v28, %v256_v27  ;;  %v259_v31 = vld [vmem:[#allocation8 + $0x98] sm:$0xff]  ;;  %v260_v33 = vld [vmem:[#allocation8 + $0xa0] sm:$0xff] }
  0x61   :  { %1759 = vmatpush3.bf16.msra.mxu0 %v1758_v7  ;;  %v1782_v32 = vpack.c.bf16 %v259_v31, %v258_v29  ;;  %v261_v34 = vld [vmem:[#allocation8 + $0xa8] sm:$0xff]  ;;  %v262_v36 = vld [vmem:[#allocation8 + $0xb0] sm:$0xff]  ;;  %v263_v37 = vld [vmem:[#allocation8 + $0xb8] sm:$0xff]  ;;  %p2115_p2 = pnand %p2114_p1, %p2108_p12 }
  0x62   :  { %1760 = vmatprep.subr.bf16.mxu0 %v2144_v0  ;;  %1780 = vmatpush3.bf16.msra.mxu1 %v1779_v30  ;;  %v1785_v35 = vpack.c.bf16 %v261_v34, %v260_v33  ;;  %v1788_v38 = vpack.c.bf16 %v263_v37, %v262_v36  ;;  %v264_v39 = vld [vmem:[#allocation8 + $0xc0] sm:$0xff]  ;;  %v265_v40 = vld [vmem:[#allocation8 + $0xc8] sm:$0xff]  ;;  %v266_v42 = vld [vmem:[#allocation8 + $0xd0] sm:$0xff] }
  0x63   :  { %1781 = vmatprep.subr.bf16.mxu1 %v2144_v0  ;;  %v1791_v41 = vpack.c.bf16 %v265_v40, %v264_v39  ;;  %v267_v43 = vld [vmem:[#allocation8 + $0xd8] sm:$0xff]  ;;  %v268_v45 = vld [vmem:[#allocation8 + $0xe0] sm:$0xff]  ;;  %v269_v46 = vld [vmem:[#allocation8 + $0xe8] sm:$0xff] }
  0x64   :  { %v1794_v44 = vpack.c.bf16 %v267_v43, %v266_v42  ;;  %v1797_v47 = vpack.c.bf16 %v269_v46, %v268_v45  ;;  %v2282_v48 = vld [vmem:[#allocation2] sm:$0xff]  ;;  %v270_v51 = vld [vmem:[#allocation8 + $0xf0] sm:$0xff]  ;;  %v271_v52 = vld [vmem:[#allocation8 + $0xf8] sm:$0xff] }
  0x65   :  { %1762 = vmatpush3.bf16.msra.mxu0 %v1761_v10  ;;  %v1800_v53 = vpack.c.bf16 %v271_v52, %v270_v51  ;;  %v1244_v54 = vld [vmem:[%s2397_s4] ss:$0 sm:$0xff]  ;;  %v419_v55 = vld [vmem:[#allocation8 + $0x100] sm:$0xff]  ;;  %v421_v62 = vld [vmem:[#allocation8 + $0x110] sm:$0xff] }
  0x66   :  { %1763 = vmatprep.subr.bf16.mxu0 %v2144_v0  ;;  %1783 = vmatpush3.bf16.msra.mxu1 %v1782_v32  ;;  %v420_v56 = vld [vmem:[#allocation8 + $0x108] sm:$0xff]  ;;  %v422_v63 = vld [vmem:[#allocation8 + $0x118] sm:$0xff]  ;;  %v423_v3 = vld [vmem:[#allocation8 + $0x120] sm:$0xff] }
  0x67   :  { %1784 = vmatprep.subr.bf16.mxu1 %v2144_v0  ;;  %v1803_v60 = vpack.c.bf16 %v420_v56, %v419_v55  ;;  %v1806_v2 = vpack.c.bf16 %v422_v63, %v421_v62  ;;  %v424_v4 = vld [vmem:[#allocation8 + $0x128] sm:$0xff]  ;;  %v425_v6 = vld [vmem:[#allocation8 + $0x130] sm:$0xff]  ;;  %v426_v7 = vld [vmem:[#allocation8 + $0x138] sm:$0xff] }
  0x68   :  { %v1809_v5 = vpack.c.bf16 %v424_v4, %v423_v3  ;;  %v1812_v8 = vpack.c.bf16 %v426_v7, %v425_v6  ;;  %v427_v9 = vld [vmem:[#allocation8 + $0x140] sm:$0xff]  ;;  %v428_v10 = vld [vmem:[#allocation8 + $0x148] sm:$0xff]  ;;  %v429_v12 = vld [vmem:[#allocation8 + $0x150] sm:$0xff] }
  0x69   :  { %1765 = vmatpush3.bf16.msra.mxu0 %v1764_v13  ;;  %v1815_v11 = vpack.c.bf16 %v428_v10, %v427_v9  ;;  %v430_v13 = vld [vmem:[#allocation8 + $0x158] sm:$0xff]  ;;  %v431_v15 = vld [vmem:[#allocation8 + $0x160] sm:$0xff]  ;;  %v433_v18 = vld [vmem:[#allocation8 + $0x170] sm:$0xff] }
  0x6a   :  { %1766 = vmatprep.subr.bf16.mxu0 %v2144_v0  ;;  %1786 = vmatpush3.bf16.msra.mxu1 %v1785_v35  ;;  %v1818_v14 = vpack.c.bf16 %v430_v13, %v429_v12  ;;  %v585_v23 = vld [vmem:[#allocation8 + $0x180] sm:$0xff]  ;;  %v586_v24 = vld [vmem:[#allocation8 + $0x188] sm:$0xff]  ;;  %v587_v28 = vld [vmem:[#allocation8 + $0x190] sm:$0xff] }
  0x6b   :  { %1787 = vmatprep.subr.bf16.mxu1 %v2144_v0  ;;  %v1827_v27 = vpack.c.bf16 %v586_v24, %v585_v23  ;;  %v588_v29 = vld [vmem:[#allocation8 + $0x198] sm:$0xff]  ;;  %v589_v32 = vld [vmem:[#allocation8 + $0x1a0] sm:$0xff]  ;;  %v590_v33 = vld [vmem:[#allocation8 + $0x1a8] sm:$0xff] }
  0x6c   :  { %v1830_v31 = vpack.c.bf16 %v588_v29, %v587_v28  ;;  %v1833_v34 = vpack.c.bf16 %v590_v33, %v589_v32  ;;  %v591_v35 = vld [vmem:[#allocation8 + $0x1b0] sm:$0xff]  ;;  %v592_v36 = vld [vmem:[#allocation8 + $0x1b8] sm:$0xff]  ;;  %v594_v39 = vld [vmem:[#allocation8 + $0x1c8] sm:$0xff] }
  0x6d   :  { %1768 = vmatpush3.bf16.msra.mxu0 %v1767_v16  ;;  %v432_v16 = vld [vmem:[#allocation8 + $0x168] sm:$0xff]  ;;  %v1836_v37 = vpack.c.bf16 %v592_v36, %v591_v35  ;;  %v596_v42 = vld [vmem:[#allocation8 + $0x1d8] sm:$0xff]  ;;  %v769_v63 = vld [vmem:[#allocation8 + $0x2a0] sm:$0xff] }
  0x6e   :  { %1769 = vmatprep.subr.bf16.mxu0 %v2144_v0  ;;  %1789 = vmatpush3.bf16.msra.mxu1 %v1788_v38  ;;  %v1821_v17 = vpack.c.bf16 %v432_v16, %v431_v15  ;;  %v593_v38 = vld [vmem:[#allocation8 + $0x1c0] sm:$0xff]  ;;  %v598_v45 = vld [vmem:[#allocation8 + $0x1e8] sm:$0xff]  ;;  %v771_v4 = vld [vmem:[#allocation8 + $0x2b0] sm:$0xff] }
  0x6f   :  { %1790 = vmatprep.subr.bf16.mxu1 %v2144_v0  ;;  %v1839_v40 = vpack.c.bf16 %v594_v39, %v593_v38  ;;  %v1248_v52 = vld [vmem:[%s2397_s4 + $0x2] ss:$0 sm:$0xff]  ;;  %v773_v7 = vld [vmem:[#allocation8 + $0x2c0] sm:$0xff]  ;;  %v775_v10 = vld [vmem:[#allocation8 + $0x2d0] sm:$0xff] }
  0x70   :  { %v777_v13 = vld [vmem:[#allocation8 + $0x2e0] sm:$0xff]  ;;  %v754_v28 = vld [vmem:[#allocation8 + $0x230] sm:$0xff]  ;;  %v755_v29 = vld [vmem:[#allocation8 + $0x238] sm:$0xff] }
  0x71   :  { %1771 = vmatpush3.bf16.msra.mxu0 %v1770_v19  ;;  %v434_v19 = vld [vmem:[#allocation8 + $0x178] sm:$0xff]  ;;  %v748_v16 = vld [vmem:[#allocation8 + $0x200] sm:$0xff]  ;;  %v758_v33 = vld [vmem:[#allocation8 + $0x250] sm:$0xff] }
  0x72   :  { %1772 = vmatprep.subr.bf16.mxu0 %v2144_v0  ;;  %1792 = vmatpush3.bf16.msra.mxu1 %v1791_v41  ;;  %v1824_v20 = vpack.c.bf16 %v434_v19, %v433_v18  ;;  %v595_v41 = vld [vmem:[#allocation8 + $0x1d0] sm:$0xff]  ;;  %v752_v24 = vld [vmem:[#allocation8 + $0x220] sm:$0xff] }
  0x73   :  { %1793 = vmatprep.subr.bf16.mxu1 %v2144_v0  ;;  %v1842_v43 = vpack.c.bf16 %v596_v42, %v595_v41  ;;  %v760_v36 = vld [vmem:[#allocation8 + $0x260] sm:$0xff]  ;;  %v762_v39 = vld [vmem:[#allocation8 + $0x270] sm:$0xff]  ;;  %v1246_v41 = vld [vmem:[%s2397_s4 + $0x1] ss:$0 sm:$0xff] }
  0x74   :  { %v1021_v42 = vld [vmem:[#allocation8 + $0x380] sm:$0xff] }
  0x75   :  { %1774 = vmatpush3.bf16.msra.mxu0 %v1773_v22 }
  0x76   :  { %1775 = vmatprep.subr.bf16.mxu0 %v2144_v0  ;;  %1795 = vmatpush3.bf16.msra.mxu1 %v1794_v44  ;;  %v597_v44 = vld [vmem:[#allocation8 + $0x1e0] sm:$0xff] }
  0x77   :  { %1796 = vmatprep.subr.bf16.mxu1 %v2144_v0  ;;  %v1845_v46 = vpack.c.bf16 %v598_v45, %v597_v44 }
  0x79   :  { %1777 = vmatpush3.bf16.msra.mxu0 %v1776_v25  ;;  %v2311_v25 = vld [vmem:[#allocation5] sm:$0xff] }
  0x7a   :  { %1454 = vmatprep.subr.mxu0 %v2146_v1  ;;  %1798 = vmatpush3.bf16.msra.mxu1 %v1797_v47  ;;  %v599_v47 = vld [vmem:[#allocation8 + $0x1f0] sm:$0xff] }
  0x7b   :  { %1799 = vmatprep.subr.bf16.mxu1 %v2144_v0 }
  0x7c   :  { %1452 = vmatmul.mubr.f32.vlgmr.msra.gmra.mrb[0].mxu0 %v2269_v26 }
  0x7d   :  { %1456 = vmatprep.mubr.msk.f32.mxu0 %vm2145_vm0, %v2146_v1 }
  0x7e   :  { %1801 = vmatpush3.bf16.msra.mxu1 %v1800_v53 }
  0x7f   :  { %1802 = vmatprep.subr.bf16.mxu1 %v2144_v0 }
 0x14f   :  { %v172_v49 = vpop.f32.mrb[0].mxu0 }
 0x150   :  { %v1453_v50 = vpop.f32.mrb[1].mxu0  ;;  %1455 = vmatpush3.msra.mxu0 %v172_v49 }
 0x151   :  { %1457 = vmatmul.mubr.msk.f32.vlgmr.msra.gmra.mrb[2].mxu0 %vm180_vm1, %v2282_v48  ;;  %1494 = vmatprep.subr.mxu0 %v2146_v1 }
 0x152   :  { %1496 = vmatprep.mubr.msk.f32.mxu0 %vm2145_vm0, %v2146_v1 }
 0x224   :  { %v250_v57 = vpop.f32.mrb[2].mxu0 }
 0x225   :  { %v251_v58 = vadd.f32 %v1244_v54, %v250_v57  ;;  %v1458_v59 = vpop.f32.mrb[3].mxu0  ;;  %v765_v57 = vld [vmem:[#allocation8 + $0x280] sm:$0xff] }
 0x227   :  { %v254_v61 = vmax.f32 %v251_v58, 0.0  ;;  %v766_v58 = vld [vmem:[#allocation8 + $0x288] sm:$0xff] }
 0x228   :  { %v1851_v59 = vpack.c.bf16 %v766_v58, %v765_v57  ;;  %v1029_v57 = vld [vmem:[#allocation8 + $0x3c0] sm:$0xff]  ;;  %v1030_v58 = vld [vmem:[#allocation8 + $0x3c8] sm:$0xff] }
 0x229   :  { %1492 = vmatmul.mubr.f32.vlgmr.msra.gmra.mrb[0].mxu1 %v254_v61  ;;  %v768_v61 = vld [vmem:[#allocation8 + $0x298] sm:$0xff] }
 0x22a   :  { %1804 = vmatpush3.bf16.msra.mxu1 %v1803_v60  ;;  %1531 = vmatprep.mubr.msk.f32.mxu1 %vm2145_vm0, %v2146_v1  ;;  %v767_v60 = vld [vmem:[#allocation8 + $0x290] sm:$0xff] }
 0x22b   :  { %1805 = vmatprep.subr.bf16.mxu1 %v2144_v0  ;;  %v1854_v62 = vpack.c.bf16 %v768_v61, %v767_v60  ;;  %v1031_v60 = vld [vmem:[#allocation8 + $0x3d0] sm:$0xff]  ;;  %v1032_v61 = vld [vmem:[#allocation8 + $0x3d8] sm:$0xff] }
 0x22e   :  { %1807 = vmatpush3.bf16.msra.mxu1 %v1806_v2  ;;  %v770_v2 = vld [vmem:[#allocation8 + $0x2a8] sm:$0xff] }
 0x22f   :  { %1808 = vmatprep.subr.bf16.mxu1 %v2144_v0  ;;  %v1857_v3 = vpack.c.bf16 %v770_v2, %v769_v63  ;;  %v1033_v63 = vld [vmem:[#allocation8 + $0x3e0] sm:$0xff]  ;;  %v1034_v2 = vld [vmem:[#allocation8 + $0x3e8] sm:$0xff] }
 0x232   :  { %1810 = vmatpush3.bf16.msra.mxu1 %v1809_v5  ;;  %v772_v5 = vld [vmem:[#allocation8 + $0x2b8] sm:$0xff] }
 0x233   :  { %1811 = vmatprep.subr.bf16.mxu1 %v2144_v0  ;;  %v1860_v6 = vpack.c.bf16 %v772_v5, %v771_v4  ;;  %v1035_v4 = vld [vmem:[#allocation8 + $0x3f0] sm:$0xff]  ;;  %v1036_v5 = vld [vmem:[#allocation8 + $0x3f8] sm:$0xff] }
 0x236   :  { %1813 = vmatpush3.bf16.msra.mxu1 %v1812_v8  ;;  %v774_v8 = vld [vmem:[#allocation8 + $0x2c8] sm:$0xff] }
 0x237   :  { %1814 = vmatprep.subr.bf16.mxu1 %v2144_v0  ;;  %v1863_v9 = vpack.c.bf16 %v774_v8, %v773_v7  ;;  %v780_v7 = vld [vmem:[#allocation8 + $0x2f8] sm:$0xff]  ;;  %v1950_v8 = vpack.c.bf16 %v1036_v5, %v1035_v4 }
 0x238   :  { %v1131_v4 = vld [vmem:[#allocation8 + $0x458] sm:$0xff] }
 0x23a   :  { %1816 = vmatpush3.bf16.msra.mxu1 %v1815_v11  ;;  %v776_v11 = vld [vmem:[#allocation8 + $0x2d8] sm:$0xff] }
 0x23b   :  { %1817 = vmatprep.subr.bf16.mxu1 %v2144_v0  ;;  %v1866_v12 = vpack.c.bf16 %v776_v11, %v775_v10  ;;  %v1250_v10 = vld [vmem:[%s2397_s4 + $0x3] ss:$0 sm:$0xff]  ;;  %v929_v11 = vld [vmem:[#allocation8 + $0x300] sm:$0xff] }
 0x23e   :  { %1819 = vmatpush3.bf16.msra.mxu1 %v1818_v14  ;;  %v778_v14 = vld [vmem:[#allocation8 + $0x2e8] sm:$0xff] }
 0x23f   :  { %1820 = vmatprep.subr.bf16.mxu1 %v2144_v0  ;;  %v1869_v15 = vpack.c.bf16 %v778_v14, %v777_v13 }
 0x242   :  { %1822 = vmatpush3.bf16.msra.mxu1 %v1821_v17  ;;  %v749_v17 = vld [vmem:[#allocation8 + $0x208] sm:$0xff] }
 0x243   :  { %1823 = vmatprep.subr.bf16.mxu1 %v2144_v0  ;;  %v1875_v18 = vpack.c.bf16 %v749_v17, %v748_v16 }
 0x246   :  { %1825 = vmatpush3.bf16.msra.mxu1 %v1824_v20  ;;  %v750_v20 = vld [vmem:[#allocation8 + $0x210] sm:$0xff] }
 0x247   :  { %1850 = vmatprep.subr.bf16.mxu1 %v2144_v0 }
 0x249   :  { %1532 = vmatmul.mubr.f32.vlgmr.msra.gmra.mrb[2].mxu1 %v2269_v26 }
 0x24a   :  { %1611 = vmatprep.mubr.msk.f32.mxu1 %vm2145_vm0, %v2146_v1  ;;  %1852 = vmatpush3.bf16.msra.mxu1 %v1851_v59  ;;  %v1938_v59 = vpack.c.bf16 %v1030_v58, %v1029_v57  ;;  %v1125_v57 = vld [vmem:[#allocation8 + $0x428] sm:$0xff] }
 0x24b   :  { %1853 = vmatprep.subr.bf16.mxu1 %v2144_v0 }
 0x24e   :  { %1855 = vmatpush3.bf16.msra.mxu1 %v1854_v62  ;;  %v1942_v62 = vpack.c.bf16 %v1032_v61, %v1031_v60  ;;  %v1127_v60 = vld [vmem:[#allocation8 + $0x438] sm:$0xff] }
 0x24f   :  { %1856 = vmatprep.subr.bf16.mxu1 %v2144_v0 }
 0x252   :  { %1858 = vmatpush3.bf16.msra.mxu1 %v1857_v3  ;;  %v1946_v3 = vpack.c.bf16 %v1034_v2, %v1033_v63  ;;  %v1129_v63 = vld [vmem:[#allocation8 + $0x448] sm:$0xff] }
 0x253   :  { %1859 = vmatprep.subr.bf16.mxu1 %v2144_v0 }
 0x256   :  { %1861 = vmatpush3.bf16.msra.mxu1 %v1860_v6  ;;  %v779_v6 = vld [vmem:[#allocation8 + $0x2f0] sm:$0xff] }
 0x257   :  { %1862 = vmatprep.subr.bf16.mxu1 %v2144_v0 }
 0x25a   :  { %1864 = vmatpush3.bf16.msra.mxu1 %v1863_v9  ;;  %v1872_v9 = vpack.c.bf16 %v780_v7, %v779_v6  ;;  %v1132_v6 = vld [vmem:[#allocation8 + $0x460] sm:$0xff]  ;;  %v1133_v7 = vld [vmem:[#allocation8 + $0x468] sm:$0xff] }
 0x25b   :  { %1865 = vmatprep.subr.bf16.mxu1 %v2144_v0 }
 0x25e   :  { %1867 = vmatpush3.bf16.msra.mxu1 %v1866_v12  ;;  %v930_v12 = vld [vmem:[#allocation8 + $0x308] sm:$0xff] }
 0x25f   :  { %1868 = vmatprep.subr.bf16.mxu1 %v2144_v0  ;;  %v1899_v16 = vpack.c.bf16 %v930_v12, %v929_v11 }
 0x262   :  { %1870 = vmatpush3.bf16.msra.mxu1 %v1869_v15 }
 0x263   :  { %1871 = vmatprep.subr.bf16.mxu1 %v2144_v0 }
 0x266   :  { %1873 = vmatpush3.bf16.msra.mxu1 %v1872_v9  ;;  %v1134_v9 = vld [vmem:[#allocation8 + $0x470] sm:$0xff] }
 0x267   :  { %1898 = vmatprep.subr.bf16.mxu1 %v2144_v0 }
 0x2fc   :  { %v339_v21 = vpop.f32.mrb[0].mxu1 }
 0x2fd   :  { %v1493_v22 = vpop.f32.mrb[1].mxu1  ;;  %1495 = vmatpush3.msra.mxu0 %v339_v21  ;;  %v751_v21 = vld [vmem:[#allocation8 + $0x218] sm:$0xff] }
 0x2fe   :  { %1497 = vmatmul.mubr.msk.f32.vlgmr.msra.gmra.mrb[4].mxu0 %vm180_vm1, %v2282_v48  ;;  %1534 = vmatprep.subr.mxu0 %v2146_v1  ;;  %v600_v48 = vld [vmem:[#allocation8 + $0x1f8] sm:$0xff]  ;;  %v1878_v23 = vpack.c.bf16 %v751_v21, %v750_v20  ;;  %v933_v21 = vld [vmem:[#allocation8 + $0x320] sm:$0xff] }
 0x2ff   :  { %1536 = vmatprep.mubr.msk.f32.mxu0 %vm2145_vm0, %v2146_v1  ;;  %v1848_v49 = vpack.c.bf16 %v600_v48, %v599_v47  ;;  %v1023_v47 = vld [vmem:[#allocation8 + $0x390] sm:$0xff]  ;;  %v1024_v48 = vld [vmem:[#allocation8 + $0x398] sm:$0xff] }
 0x31c   :  { %v502_v26 = vpop.f32.mrb[2].mxu1 }
 0x31d   :  { %v1533_v30 = vpop.f32.mrb[3].mxu1  ;;  %1535 = vmatpush3.msra.mxu0 %v502_v26 }
 0x31e   :  { %1537 = vmatmul.mubr.msk.f32.vlgmr.msra.gmra.mrb[6].mxu0 %vm180_vm1, %v2311_v25  ;;  %1826 = vmatprep.subr.bf16.mxu0 %v2144_v0  ;;  %v1884_v30 = vpack.c.bf16 %v755_v29, %v754_v28  ;;  %v937_v28 = vld [vmem:[#allocation8 + $0x340] sm:$0xff]  ;;  %v938_v29 = vld [vmem:[#allocation8 + $0x348] sm:$0xff] }
 0x31f   :  { %1828 = vmatpush3.bf16.msra.mxu0 %v1827_v27  ;;  %1571 = vmatprep.mubr.msk.f32.mxu0 %vm2145_vm0, %v2146_v1  ;;  %v753_v27 = vld [vmem:[#allocation8 + $0x228] sm:$0xff] }
 0x320   :  { %1829 = vmatprep.subr.bf16.mxu0 %v2144_v0  ;;  %v1881_v26 = vpack.c.bf16 %v753_v27, %v752_v24  ;;  %v935_v24 = vld [vmem:[#allocation8 + $0x330] sm:$0xff]  ;;  %v936_v27 = vld [vmem:[#allocation8 + $0x338] sm:$0xff] }
 0x323   :  { %1831 = vmatpush3.bf16.msra.mxu0 %v1830_v31  ;;  %v757_v31 = vld [vmem:[#allocation8 + $0x248] sm:$0xff] }
 0x324   :  { %1832 = vmatprep.subr.bf16.mxu0 %v2144_v0 }
 0x327   :  { %1834 = vmatpush3.bf16.msra.mxu0 %v1833_v34  ;;  %v759_v34 = vld [vmem:[#allocation8 + $0x258] sm:$0xff] }
 0x328   :  { %1835 = vmatprep.subr.bf16.mxu0 %v2144_v0  ;;  %v1890_v35 = vpack.c.bf16 %v759_v34, %v758_v33  ;;  %v942_v33 = vld [vmem:[#allocation8 + $0x368] sm:$0xff] }
 0x32b   :  { %1837 = vmatpush3.bf16.msra.mxu0 %v1836_v37  ;;  %v761_v37 = vld [vmem:[#allocation8 + $0x268] sm:$0xff] }
 0x32c   :  { %1838 = vmatprep.subr.bf16.mxu0 %v2144_v0  ;;  %v1893_v38 = vpack.c.bf16 %v761_v37, %v760_v36  ;;  %v943_v37 = vld [vmem:[#allocation8 + $0x370] sm:$0xff] }
 0x32f   :  { %1840 = vmatpush3.bf16.msra.mxu0 %v1839_v40  ;;  %v763_v40 = vld [vmem:[#allocation8 + $0x278] sm:$0xff] }
 0x330   :  { %1841 = vmatprep.subr.bf16.mxu0 %v2144_v0  ;;  %v1896_v44 = vpack.c.bf16 %v763_v40, %v762_v39  ;;  %v1120_v40 = vld [vmem:[#allocation8 + $0x400] sm:$0xff] }
 0x333   :  { %1843 = vmatpush3.bf16.msra.mxu0 %v1842_v43  ;;  %v1022_v43 = vld [vmem:[#allocation8 + $0x388] sm:$0xff] }
 0x334   :  { %1844 = vmatprep.subr.bf16.mxu0 %v2144_v0 }
 0x337   :  { %1846 = vmatpush3.bf16.msra.mxu0 %v1845_v46  ;;  %v1922_v46 = vpack.c.bf16 %v1022_v43, %v1021_v42  ;;  %v1254_v43 = vld [vmem:[%s2397_s4 + $0x6] ss:$0 sm:$0xff] }
 0x338   :  { %1847 = vmatprep.subr.bf16.mxu0 %v2144_v0 }
 0x33b   :  { %1849 = vmatpush3.bf16.msra.mxu0 %v1848_v49 }
 0x33c   :  { %1574 = vmatprep.subr.mxu0 %v2146_v1 }
 0x3d1   :  { %v2326_v50 = vpop.f32.mrb[4].mxu0 }
 0x3d2   :  { %v1498_v51 = vpop.f32.mrb[5].mxu0  ;;  %v414_v45 = vadd.f32 %v1246_v41, %v2326_v50  ;;  %v1121_v41 = vld [vmem:[#allocation8 + $0x408] sm:$0xff] }
 0x3d3   :  { %v1926_v51 = vpack.c.bf16 %v1024_v48, %v1023_v47  ;;  %v1954_v42 = vpack.c.bf16 %v1121_v41, %v1120_v40 }
 0x3d4   :  { %v417_v49 = vmax.f32 %v414_v45, 0.0 }
 0x3f1   :  { %v579_v53 = vpop.f32.mrb[6].mxu0 }
 0x3f2   :  { %v580_v54 = vadd.f32 %v1248_v52, %v579_v53  ;;  %v1538_v55 = vpop.f32.mrb[7].mxu0  ;;  %v1025_v52 = vld [vmem:[#allocation8 + $0x3a0] sm:$0xff]  ;;  %v1026_v53 = vld [vmem:[#allocation8 + $0x3a8] sm:$0xff] }
 0x3f3   :  { %v1027_v55 = vld [vmem:[#allocation8 + $0x3b0] sm:$0xff] }
 0x3f4   :  { %v583_v56 = vmax.f32 %v580_v54, 0.0  ;;  %v1930_v54 = vpack.c.bf16 %v1026_v53, %v1025_v52  ;;  %v1123_v52 = vld [vmem:[#allocation8 + $0x418] sm:$0xff] }
 0x3f6   :  { %1572 = vmatmul.mubr.f32.vlgmr.msra.gmra.mrb[8].mxu0 %v583_v56  ;;  %v1028_v56 = vld [vmem:[#allocation8 + $0x3b8] sm:$0xff] }
 0x3f7   :  { %1576 = vmatprep.mubr.msk.f32.mxu0 %vm2145_vm0, %v2146_v1  ;;  %v1934_v50 = vpack.c.bf16 %v1028_v56, %v1027_v55 }
 0x4c9   :  { %v668_v19 = vpop.f32.mrb[8].mxu0 }
 0x4ca   :  { %v1573_v22 = vpop.f32.mrb[9].mxu0  ;;  %1575 = vmatpush3.msra.mxu0 %v668_v19  ;;  %v932_v19 = vld [vmem:[#allocation8 + $0x318] sm:$0xff] }
 0x4cb   :  { %1577 = vmatmul.mubr.msk.f32.vlgmr.msra.gmra.mrb[10].mxu0 %vm180_vm1, %v2311_v25  ;;  %1874 = vmatprep.subr.bf16.mxu0 %v2144_v0  ;;  %v756_v25 = vld [vmem:[#allocation8 + $0x240] sm:$0xff]  ;;  %v934_v22 = vld [vmem:[#allocation8 + $0x328] sm:$0xff] }
 0x4cc   :  { %1876 = vmatpush3.bf16.msra.mxu0 %v1875_v18  ;;  %1646 = vmatprep.mubr.msk.f32.mxu0 %vm2145_vm0, %v2146_v1  ;;  %v1887_v32 = vpack.c.bf16 %v757_v31, %v756_v25  ;;  %v931_v18 = vld [vmem:[#allocation8 + $0x310] sm:$0xff]  ;;  %v940_v25 = vld [vmem:[#allocation8 + $0x358] sm:$0xff] }
 0x4cd   :  { %1877 = vmatprep.subr.bf16.mxu0 %v2144_v0  ;;  %v1902_v20 = vpack.c.bf16 %v932_v19, %v931_v18 }
 0x4d0   :  { %1879 = vmatpush3.bf16.msra.mxu0 %v1878_v23  ;;  %v1905_v23 = vpack.c.bf16 %v934_v22, %v933_v21  ;;  %v1218_v22 = vld [vmem:[#allocation10 + $0x8] sm:$0xff] }
 0x4d1   :  { %1880 = vmatprep.subr.bf16.mxu0 %v2144_v0 }
 0x4d4   :  { %1882 = vmatpush3.bf16.msra.mxu0 %v1881_v26  ;;  %v1908_v26 = vpack.c.bf16 %v936_v27, %v935_v24  ;;  %v1220_v27 = vld [vmem:[#allocation10 + $0x10] sm:$0xff] }
 0x4d5   :  { %1883 = vmatprep.subr.bf16.mxu0 %v2144_v0 }
 0x4d8   :  { %1885 = vmatpush3.bf16.msra.mxu0 %v1884_v30  ;;  %v1911_v30 = vpack.c.bf16 %v938_v29, %v937_v28 }
 0x4d9   :  { %1886 = vmatprep.subr.bf16.mxu0 %v2144_v0 }
 0x4dc   :  { %1888 = vmatpush3.bf16.msra.mxu0 %v1887_v32  ;;  %v941_v32 = vld [vmem:[#allocation8 + $0x360] sm:$0xff] }
 0x4dd   :  { %1889 = vmatprep.subr.bf16.mxu0 %v2144_v0  ;;  %v1917_v34 = vpack.c.bf16 %v942_v33, %v941_v32 }
 0x4e0   :  { %1891 = vmatpush3.bf16.msra.mxu0 %v1890_v35 }
 0x4e1   :  { %1892 = vmatprep.subr.bf16.mxu0 %v2144_v0 }
 0x4e4   :  { %1894 = vmatpush3.bf16.msra.mxu0 %v1893_v38  ;;  %v944_v38 = vld [vmem:[#allocation8 + $0x378] sm:$0xff] }
 0x4e5   :  { %1895 = vmatprep.subr.bf16.mxu0 %v2144_v0  ;;  %v1920_v39 = vpack.c.bf16 %v944_v38, %v943_v37 }
 0x4e8   :  { %1897 = vmatpush3.bf16.msra.mxu0 %v1896_v44  ;;  %v1252_v44 = vld [vmem:[%s2397_s4 + $0x4] ss:$0 sm:$0xff] }
 0x4e9   :  { %1923 = vmatprep.subr.bf16.mxu0 %v1922_v46 }
 0x4eb   :  { %1647 = vmatmul.mubr.f32.vlgmr.msra.gmra.mrb[12].mxu0 %v417_v49 }
 0x4ec   :  { %1716 = vmatprep.mubr.f32.mxu0 %v417_v49  ;;  %1925 = vmatpush3.bf16.msra.mxu0 %v1922_v46 }
 0x4ed   :  { %1927 = vmatprep.subr.bf16.mxu0 %v1926_v51 }
 0x4f0   :  { %1929 = vmatpush3.bf16.msra.mxu0 %v1926_v51  ;;  %v1122_v51 = vld [vmem:[#allocation8 + $0x410] sm:$0xff] }
 0x4f1   :  { %1931 = vmatprep.subr.bf16.mxu0 %v1930_v54  ;;  %v1958_v55 = vpack.c.bf16 %v1123_v52, %v1122_v51 }
 0x4f4   :  { %1933 = vmatpush3.bf16.msra.mxu0 %v1930_v54 }
 0x4f5   :  { %1935 = vmatprep.subr.bf16.mxu0 %v1934_v50 }
 0x4f8   :  { %1937 = vmatpush3.bf16.msra.mxu0 %v1934_v50  ;;  %v1124_v50 = vld [vmem:[#allocation8 + $0x420] sm:$0xff] }
 0x4f9   :  { %1939 = vmatprep.subr.bf16.mxu0 %v1938_v59  ;;  %v1962_v58 = vpack.c.bf16 %v1125_v57, %v1124_v50 }
 0x4fc   :  { %1941 = vmatpush3.bf16.msra.mxu0 %v1938_v59  ;;  %v1126_v59 = vld [vmem:[#allocation8 + $0x430] sm:$0xff] }
 0x4fd   :  { %1943 = vmatprep.subr.bf16.mxu0 %v1942_v62  ;;  %v1966_v61 = vpack.c.bf16 %v1127_v60, %v1126_v59 }
 0x500   :  { %1945 = vmatpush3.bf16.msra.mxu0 %v1942_v62  ;;  %v1128_v62 = vld [vmem:[#allocation8 + $0x440] sm:$0xff] }
 0x501   :  { %1947 = vmatprep.subr.bf16.mxu0 %v1946_v3  ;;  %v1970_v2 = vpack.c.bf16 %v1129_v63, %v1128_v62 }
 0x504   :  { %1949 = vmatpush3.bf16.msra.mxu0 %v1946_v3  ;;  %v1130_v3 = vld [vmem:[#allocation8 + $0x450] sm:$0xff] }
 0x505   :  { %1951 = vmatprep.subr.bf16.mxu0 %v1950_v8  ;;  %v1974_v5 = vpack.c.bf16 %v1131_v4, %v1130_v3 }
 0x508   :  { %1953 = vmatpush3.bf16.msra.mxu0 %v1950_v8  ;;  %v1978_v8 = vpack.c.bf16 %v1133_v7, %v1132_v6 }
 0x59e   :  { %v742_v13 = vpop.f32.mrb[10].mxu0 }
 0x59f   :  { %v743_v14 = vadd.f32 %v1250_v10, %v742_v13  ;;  %v1578_v15 = vpop.f32.mrb[11].mxu0  ;;  %v1135_v10 = vld [vmem:[#allocation8 + $0x478] sm:$0xff] }
 0x5a0   :  { %v1982_v11 = vpack.c.bf16 %v1135_v10, %v1134_v9 }
 0x5a1   :  { %v746_v17 = vmax.f32 %v743_v14, 0.0 }
 0x5a3   :  { %1612 = vmatmul.mubr.f32.vlgmr.msra.gmra.mrb[4].mxu1 %v746_v17  ;;  %1717 = vmatmul.mubr.f32.vlgmr.msra.gmra.mrb[14].mxu0 %v746_v17  ;;  %v1255_v17 = vld [vmem:[%s2397_s4 + $0x7] ss:$0 sm:$0xff] }
 0x5a4   :  { %1900 = vmatpush3.bf16.msra.mxu1 %v1899_v16  ;;  %1681 = vmatprep.mubr.msk.f32.mxu1 %vm2145_vm0, %v2146_v1  ;;  %v939_v1 = vld [vmem:[#allocation8 + $0x350] sm:$0xff]  ;;  %v1253_v16 = vld [vmem:[%s2397_s4 + $0x5] ss:$0 sm:$0xff] }
 0x5a5   :  { %1901 = vmatprep.subr.bf16.mxu1 %v2144_v0  ;;  %v1914_v31 = vpack.c.bf16 %v940_v25, %v939_v1 }
 0x5a8   :  { %1903 = vmatpush3.bf16.msra.mxu1 %v1902_v20  ;;  %v1216_v20 = vld [vmem:[#allocation10] sm:$0xff] }
 0x5a9   :  { %1904 = vmatprep.subr.bf16.mxu1 %v2144_v0 }
 0x5ac   :  { %1906 = vmatpush3.bf16.msra.mxu1 %v1905_v23 }
 0x5ad   :  { %1907 = vmatprep.subr.bf16.mxu1 %v2144_v0 }
 0x5b0   :  { %1909 = vmatpush3.bf16.msra.mxu1 %v1908_v26 }
 0x5b1   :  { %1910 = vmatprep.subr.bf16.mxu1 %v2144_v0 }
 0x5b4   :  { %1912 = vmatpush3.bf16.msra.mxu1 %v1911_v30 }
 0x5b5   :  { %1913 = vmatprep.subr.bf16.mxu1 %v2144_v0 }
 0x5b8   :  { %1915 = vmatpush3.bf16.msra.mxu1 %v1914_v31 }
 0x5b9   :  { %1916 = vmatprep.subr.bf16.mxu1 %v2144_v0 }
 0x5bc   :  { %1918 = vmatpush3.bf16.msra.mxu1 %v1917_v34 }
 0x5bd   :  { %1919 = vmatprep.subr.bf16.mxu1 %v2144_v0 }
 0x5be   :  { %v918_v35 = vpop.f32.mrb[12].mxu0 }
 0x5bf   :  { %v1648_v36 = vpop.f32.mrb[13].mxu0 }
 0x5c0   :  { %1921 = vmatpush3.bf16.msra.mxu1 %v1920_v39 }
 0x5c1   :  { %1955 = vmatprep.subr.bf16.mxu1 %v1954_v42 }
 0x676   :  { %v848_v45 = vpop.f32.mrb[4].mxu1  ;;  %v1718_v0 = vpop.f32.mrb[14].mxu0 }
 0x677   :  { %v919_v46 = vadd.f32 %v918_v35, %v848_v45  ;;  %v1613_v47 = vpop.f32.mrb[5].mxu1  ;;  %v1108_v48 = vpop.f32.mrb[15].mxu0  ;;  %v1114_v12 = vadd.f32 %v1718_v0, %v1254_v43 }
 0x678   :  { %v1109_v49 = vadd.f32 %v1254_v43, %v1108_v48 }
 0x679   :  { %v926_v53 = vadd.f32 %v1252_v44, %v919_v46  ;;  %v1118_v13 = vmax.f32 %v1114_v12, 0.0 }
 0x67a   :  { %v1117_v56 = vmax.f32 %v1109_v49, 0.0 }
 0x67b   :  { %v927_v54 = vmax.f32 %v926_v53, 0.0 }
 0x67d   :  { %1682 = vmatmul.mubr.f32.vlgmr.msra.gmra.mrb[6].mxu1 %v927_v54 }
 0x67e   :  { %1957 = vmatpush3.bf16.msra.mxu1 %v1954_v42  ;;  %1751 = vmatprep.mubr.f32.mxu1 %v1117_v56 }
 0x67f   :  { %1959 = vmatprep.subr.bf16.mxu1 %v1958_v55 }
 0x682   :  { %1961 = vmatpush3.bf16.msra.mxu1 %v1958_v55 }
 0x683   :  { %1963 = vmatprep.subr.bf16.mxu1 %v1962_v58 }
 0x686   :  { %1965 = vmatpush3.bf16.msra.mxu1 %v1962_v58 }
 0x687   :  { %1967 = vmatprep.subr.bf16.mxu1 %v1966_v61 }
 0x68a   :  { %1969 = vmatpush3.bf16.msra.mxu1 %v1966_v61 }
 0x68b   :  { %1971 = vmatprep.subr.bf16.mxu1 %v1970_v2 }
 0x68e   :  { %1973 = vmatpush3.bf16.msra.mxu1 %v1970_v2 }
 0x68f   :  { %1975 = vmatprep.subr.bf16.mxu1 %v1974_v5 }
 0x692   :  { %1977 = vmatpush3.bf16.msra.mxu1 %v1974_v5 }
 0x693   :  { %1979 = vmatprep.subr.bf16.mxu1 %v1978_v8 }
 0x696   :  { %1981 = vmatpush3.bf16.msra.mxu1 %v1978_v8 }
 0x697   :  { %1983 = vmatprep.subr.bf16.mxu1 %v1982_v11 }
 0x69a   :  { %1985 = vmatpush3.bf16.msra.mxu1 %v1982_v11 }
 0x69d   :  { %1752 = vmatmul.mubr.f32.vlgmr.msra.gmra.mrb[8].mxu1 %v1118_v13 }
 0x750   :  { %v1016_v14 = vpop.f32.mrb[6].mxu1 }
 0x751   :  { %v1683_v15 = vpop.f32.mrb[7].mxu1  ;;  %v1017_v18 = vadd.f32 %v1253_v16, %v1016_v14 }
 0x753   :  { %v1221_v26 = vmul.f32 %v1216_v20, %v1017_v18 }
 0x770   :  { %v1753_v19 = vpop.f32.mrb[8].mxu1 }
 0x771   :  { %v1207_v21 = vpop.f32.mrb[9].mxu1  ;;  %v1213_v23 = vadd.f32 %v1753_v19, %v1255_v17 }
 0x772   :  { %v1208_v24 = vadd.f32 %v1255_v17, %v1207_v21 }
 0x773   :  { %v1224_v29 = vmul.f32 %v1220_v27, %v1213_v23 }
 0x774   :  { %v1222_v28 = vmul.f32 %v1218_v22, %v1208_v24 }
 0x776   :  { %v1223_v30 = vadd.f32 %v1222_v28, %v1221_v26 }
 0x778   :  { %v1225_v1 = vadd.f32 %v1224_v29, %v1223_v30 }
 0x77a   :  { %1226 = vst [vmem:[#allocation11] sm:$0xff] %v1225_v1 }
 0x77b   :  { %2118 = shalt.err (!%p2115_p2)
}
 0x77c   :  { %s2119_s25 = scalar_lea.hbm %s2399_s6, 128 }
 0x77d   :  { %p2120_p3 = scmp.ne.s32.totalorder %s2399_s6, %s2119_s25  ;;  %p2123_p4 = scmp.lt.u32.totalorder %s2119_s25, %s2399_s6 }
 0x77f   :  { %p2125_p5 = pnand %p2123_p4, %p2120_p3 }
 0x781   :  { %2128 = shalt.err (!%p2125_p5)
}
 0x782   :  { %1236 = dma.vmem_to_hbm [thread:$0]  %s1234_s21, 128, %s2399_s6, [#allocation4]  }
 0x783   :  { %2135 = dma.done.wait [#allocation4], 128  }
 0x784   :  { %2136 = vsyncadd [#allocation4], 4294967168 }
 0x785   :  { %1240 = vsyncpa [#allocation3], 1 }
 0x786   :  { %1241 = vsyncpa [#allocation6], 1 }
 0x787   :  { %1242 = vsyncpa [#allocation9], 1 }
 0x788   :  { %1243 = vsyncpa [#allocation4], 1 }

</bundles_post_ra>
